<compile_context>
chip_gen: v7x
topology: tpu7x:2x2x1
jax: 0.10.0
libtpu: 0.0.40
codegen_flags: <defaults>
</compile_context>

<pallas_src>
import jax
import jax.numpy as jnp
from jax.experimental import pallas as pl
from jax.experimental.pallas import tpu as pltpu

BN_EPS = 1e-5
LANE = 128

_VMEM_SPEC = pl.BlockSpec(memory_space=pltpu.MemorySpace.VMEM)


def _round_up(n, m=LANE):
    return ((n + m - 1) // m) * m


def _pad_axis(a, target, axis):
    pad = target - a.shape[axis]
    if pad <= 0:
        return a
    widths = [(0, 0)] * a.ndim
    widths[axis] = (0, pad)
    return jnp.pad(a, widths)


# ---------------------------------------------------------------------------
# Fused kernel: entire encoder forward in one VMEM-resident pass.
# ---------------------------------------------------------------------------
def _make_fused_kernel(num_layers, batch_norm):
    """Kernel signature: (x, [per-layer params...], wh, bh, out) where per-layer
    params are (w, gamma, beta) if batch_norm else (w, b)."""

    def kernel(*refs):
        x_ref = refs[0]
        idx = 1
        h = x_ref[...]                                           # [B, Fin_pad] f32
        for _ in range(num_layers):
            if batch_norm:
                w_ref, g_ref, be_ref = refs[idx], refs[idx + 1], refs[idx + 2]
                idx += 3
                # Linear bias omitted: under training-mode BN it is exactly
                # cancelled by the batch-mean subtraction.
                y = jnp.dot(h, w_ref[...],
                            preferred_element_type=jnp.float32)  # [B, Fout_pad]
                mean = jnp.mean(y, axis=0, keepdims=True)        # [1, Fout_pad]
                centered = y - mean
                var = jnp.mean(centered * centered, axis=0, keepdims=True)
                z = centered * jax.lax.rsqrt(var + BN_EPS)
                z = z * g_ref[...] + be_ref[...]
            else:
                w_ref, b_ref = refs[idx], refs[idx + 1]
                idx += 2
                z = jnp.dot(h, w_ref[...],
                            preferred_element_type=jnp.float32) + b_ref[...]
            h = jnp.maximum(z, 0.0)                              # ReLU

        wh_ref, bh_ref = refs[idx], refs[idx + 1]                # fused heads
        out_ref = refs[idx + 2]
        out_ref[...] = jnp.dot(h, wh_ref[...],
                               preferred_element_type=jnp.float32) + bh_ref[...]

    return kernel


# ---------------------------------------------------------------------------
# Parameter init (mirrors kaiming_uniform_(nonlinearity='relu') + default bias)
# ---------------------------------------------------------------------------
def _init_linear(key, fan_in, fan_out):
    kw, kb = jax.random.split(key)
    gain = jnp.sqrt(2.0)                         # nonlinearity='relu'
    bound_w = gain * jnp.sqrt(3.0 / fan_in)      # kaiming_uniform_
    w = jax.random.uniform(kw, (fan_in, fan_out), jnp.float32,
                           minval=-bound_w, maxval=bound_w)
    bound_b = 1.0 / jnp.sqrt(fan_in)             # default nn.Linear bias init
    b = jax.random.uniform(kb, (1, fan_out), jnp.float32,
                           minval=-bound_b, maxval=bound_b)
    return w, b


def init_encoder_params(key, layer_sizes, latent_size, batch_norm=True):
    params = {"mlp": []}
    for in_size, out_size in zip(layer_sizes[:-1], layer_sizes[1:]):
        key, sub = jax.random.split(key)
        w, b = _init_linear(sub, in_size, out_size)
        layer = {"w": w, "b": b}
        if batch_norm:
            layer["gamma"] = jnp.ones((1, out_size), jnp.float32)
            layer["beta"] = jnp.zeros((1, out_size), jnp.float32)
        params["mlp"].append(layer)

    key, km = jax.random.split(key)
    wm, bm = _init_linear(km, layer_sizes[-1], latent_size)
    key, kv = jax.random.split(key)
    wv, bv = _init_linear(kv, layer_sizes[-1], latent_size)
    params["wm"], params["bm"] = wm, bm
    params["wv"], params["bv"] = wv, bv

    # ---- Pre-padded, lane-aligned parameter copies consumed by the kernel ----
    sizes_pad = [_round_up(s) for s in layer_sizes]
    klayers = []
    for i, layer in enumerate(params["mlp"]):
        wp = _pad_axis(_pad_axis(layer["w"], sizes_pad[i], 0), sizes_pad[i + 1], 1)
        if batch_norm:
            klayers.append({
                "w": wp,
                "gamma": _pad_axis(layer["gamma"], sizes_pad[i + 1], 1),
                "beta": _pad_axis(layer["beta"], sizes_pad[i + 1], 1),
            })
        else:
            klayers.append({
                "w": wp,
                "b": _pad_axis(layer["b"], sizes_pad[i + 1], 1),
            })

    # Fused, lane-dense head parameters: [H_pad, l_pad] zero-padded so the single
    # HBM output store is unmasked.
    H, H_pad = layer_sizes[-1], sizes_pad[-1]
    two_l = 2 * latent_size
    l_pad = _round_up(two_l)
    wh = jnp.zeros((H_pad, l_pad), jnp.float32)
    wh = wh.at[:H, :latent_size].set(wm).at[:H, latent_size:two_l].set(wv)
    bh = jnp.zeros((1, l_pad), jnp.float32)
    bh = bh.at[:, :latent_size].set(bm).at[:, latent_size:two_l].set(bv)

    params["kernel"] = {"layers": klayers, "wh": wh, "bh": bh}
    return params


# ---------------------------------------------------------------------------
# Forward pass (single fused pallas_call)
# ---------------------------------------------------------------------------
@jax.jit
def encoder_forward(params, x):
    kp = params["kernel"]
    layers = kp["layers"]
    num_layers = len(layers)                    # static (pytree structure)
    batch_norm = "gamma" in layers[0]           # static (pytree structure)

    fin_pad = layers[0]["w"].shape[0]           # static (leaf shape)
    x_pad = _pad_axis(x.astype(jnp.float32), fin_pad, 1)

    args = [x_pad]
    for layer in layers:
        if batch_norm:
            args += [layer["w"], layer["gamma"], layer["beta"]]
        else:
            args += [layer["w"], layer["b"]]
    args += [kp["wh"], kp["bh"]]

    B = x.shape[0]
    l_pad = kp["wh"].shape[1]
    latent = params["bm"].shape[1]

    out = pl.pallas_call(
        _make_fused_kernel(num_layers, batch_norm),
        out_shape=jax.ShapeDtypeStruct((B, l_pad), jnp.float32),
        in_specs=[_VMEM_SPEC] * len(args),
        out_specs=_VMEM_SPEC,
    )(*args)

    means = out[:, :latent]
    log_vars = out[:, latent:2 * latent]
    return means, log_vars


# Pure-JAX reference (PyTorch semantics, unpadded params).
def encoder_forward_ref(params, x):
    h = x
    for layer in params["mlp"]:
        y = h @ layer["w"] + layer["b"]
        if "gamma" in layer:
            mean = jnp.mean(y, axis=0, keepdims=True)
            var = jnp.mean((y - mean) ** 2, axis=0, keepdims=True)
            y = (y - mean) / jnp.sqrt(var + BN_EPS)
            y = y * layer["gamma"] + layer["beta"]
        h = jnp.maximum(y, 0.0)
    means = h @ params["wm"] + params["bm"]
    log_vars = h @ params["wv"] + params["bv"]
    return means, log_vars


if __name__ == "__main__":
    layer_sizes = [32, 64, 48]   # Encoder(layer_sizes=[32, 64, 48], latent_size=16)
    latent_size = 16
    batch = 8

    key = jax.random.PRNGKey(0)
    kp, kx = jax.random.split(key)
    params = init_encoder_params(kp, layer_sizes, latent_size, batch_norm=True)
    x = jax.random.normal(kx, (batch, layer_sizes[0]), jnp.float32)

    means, log_vars = encoder_forward(params, x)
    jax.block_until_ready((means, log_vars))

    # sanity check vs pure-JAX reference
    ref_means, ref_logv = encoder_forward_ref(params, x)
    assert means.shape == (batch, latent_size)
    assert log_vars.shape == (batch, latent_size)
    assert jnp.allclose(means, ref_means, atol=1e-4, rtol=1e-4)
    assert jnp.allclose(log_vars, ref_logv, atol=1e-4, rtol=1e-4)

    # also exercise the batch_norm=False branch once
    params_nb = init_encoder_params(kp, layer_sizes, latent_size, batch_norm=False)
    m2, lv2 = encoder_forward(params_nb, x)
    jax.block_until_ready((m2, lv2))
    r2m, r2v = encoder_forward_ref(params_nb, x)
    assert jnp.allclose(m2, r2m, atol=1e-4, rtol=1e-4)
    assert jnp.allclose(lv2, r2v, atol=1e-4, rtol=1e-4)

    print("KERNEL_OK")
</pallas_src>

<mosaic_0001>
module attributes {stable_mosaic.version = 11 : i64} {
  func.func @kernel(%arg0: memref<8x128xf32, #tpu.memory_space<vmem>>, %arg1: memref<128x128xf32, #tpu.memory_space<vmem>>, %arg2: memref<1x128xf32, #tpu.memory_space<vmem>>, %arg3: memref<1x128xf32, #tpu.memory_space<vmem>>, %arg4: memref<128x128xf32, #tpu.memory_space<vmem>>, %arg5: memref<1x128xf32, #tpu.memory_space<vmem>>, %arg6: memref<1x128xf32, #tpu.memory_space<vmem>>, %arg7: memref<128x128xf32, #tpu.memory_space<vmem>>, %arg8: memref<1x128xf32, #tpu.memory_space<vmem>>, %arg9: memref<8x128xf32, #tpu.memory_space<vmem>>) attributes {dimension_semantics = [], scalar_prefetch = 0 : i64, scratch_operands = 0 : i64, tpu.core_type = #tpu.core_type<tc>} {
    %c0 = arith.constant 0 : index
    %c0_0 = arith.constant 0 : index
    %0 = vector.load %arg0[%c0, %c0_0] : memref<8x128xf32, #tpu.memory_space<vmem>>, vector<8x128xf32>
    %c0_1 = arith.constant 0 : index
    %c0_2 = arith.constant 0 : index
    %1 = vector.load %arg1[%c0_1, %c0_2] : memref<128x128xf32, #tpu.memory_space<vmem>>, vector<128x128xf32>
    %cst = arith.constant dense<0.000000e+00> : vector<8x128xf32>
    %2 = tpu.matmul %0, %1, %cst {dimension_numbers = #tpu.dot_dimension_numbers<[1], [0], [0], [1], [0, 0, 1, 1], [], []>} : vector<8x128xf32>, vector<128x128xf32>, vector<8x128xf32> -> vector<8x128xf32>
    %cst_3 = arith.constant dense<0.000000e+00> : vector<128xf32>
    %3 = vector.multi_reduction <add>, %2, %cst_3 [0] : vector<8x128xf32> to vector<128xf32>
    %4 = vector.shape_cast %3 : vector<128xf32> to vector<1x128xf32>
    %cst_4 = arith.constant 8.000000e+00 : f32
    %5 = vector.broadcast %cst_4 : f32 to vector<1x128xf32>
    %6 = arith.divf %4, %5 : vector<1x128xf32>
    %7 = vector.broadcast %6 : vector<1x128xf32> to vector<8x128xf32>
    %8 = arith.subf %2, %7 : vector<8x128xf32>
    %9 = arith.mulf %8, %8 : vector<8x128xf32>
    %cst_5 = arith.constant dense<0.000000e+00> : vector<128xf32>
    %10 = vector.multi_reduction <add>, %9, %cst_5 [0] : vector<8x128xf32> to vector<128xf32>
    %11 = vector.shape_cast %10 : vector<128xf32> to vector<1x128xf32>
    %cst_6 = arith.constant 8.000000e+00 : f32
    %12 = vector.broadcast %cst_6 : f32 to vector<1x128xf32>
    %13 = arith.divf %11, %12 : vector<1x128xf32>
    %cst_7 = arith.constant 9.99999974E-6 : f32
    %14 = vector.broadcast %cst_7 : f32 to vector<1x128xf32>
    %15 = arith.addf %13, %14 : vector<1x128xf32>
    %16 = math.rsqrt %15 : vector<1x128xf32>
    %17 = vector.broadcast %16 : vector<1x128xf32> to vector<8x128xf32>
    %18 = arith.mulf %8, %17 : vector<8x128xf32>
    %c0_8 = arith.constant 0 : index
    %c0_9 = arith.constant 0 : index
    %19 = vector.load %arg2[%c0_8, %c0_9] : memref<1x128xf32, #tpu.memory_space<vmem>>, vector<1x128xf32>
    %20 = vector.broadcast %19 : vector<1x128xf32> to vector<8x128xf32>
    %21 = arith.mulf %18, %20 : vector<8x128xf32>
    %c0_10 = arith.constant 0 : index
    %c0_11 = arith.constant 0 : index
    %22 = vector.load %arg3[%c0_10, %c0_11] : memref<1x128xf32, #tpu.memory_space<vmem>>, vector<1x128xf32>
    %23 = vector.broadcast %22 : vector<1x128xf32> to vector<8x128xf32>
    %24 = arith.addf %21, %23 : vector<8x128xf32>
    %cst_12 = arith.constant 0.000000e+00 : f32
    %25 = vector.broadcast %cst_12 : f32 to vector<8x128xf32>
    %26 = arith.maximumf %24, %25 : vector<8x128xf32>
    %c0_13 = arith.constant 0 : index
    %c0_14 = arith.constant 0 : index
    %27 = vector.load %arg4[%c0_13, %c0_14] : memref<128x128xf32, #tpu.memory_space<vmem>>, vector<128x128xf32>
    %cst_15 = arith.constant dense<0.000000e+00> : vector<8x128xf32>
    %28 = tpu.matmul %26, %27, %cst_15 {dimension_numbers = #tpu.dot_dimension_numbers<[1], [0], [0], [1], [0, 0, 1, 1], [], []>} : vector<8x128xf32>, vector<128x128xf32>, vector<8x128xf32> -> vector<8x128xf32>
    %cst_16 = arith.constant dense<0.000000e+00> : vector<128xf32>
    %29 = vector.multi_reduction <add>, %28, %cst_16 [0] : vector<8x128xf32> to vector<128xf32>
    %30 = vector.shape_cast %29 : vector<128xf32> to vector<1x128xf32>
    %cst_17 = arith.constant 8.000000e+00 : f32
    %31 = vector.broadcast %cst_17 : f32 to vector<1x128xf32>
    %32 = arith.divf %30, %31 : vector<1x128xf32>
    %33 = vector.broadcast %32 : vector<1x128xf32> to vector<8x128xf32>
    %34 = arith.subf %28, %33 : vector<8x128xf32>
    %35 = arith.mulf %34, %34 : vector<8x128xf32>
    %cst_18 = arith.constant dense<0.000000e+00> : vector<128xf32>
    %36 = vector.multi_reduction <add>, %35, %cst_18 [0] : vector<8x128xf32> to vector<128xf32>
    %37 = vector.shape_cast %36 : vector<128xf32> to vector<1x128xf32>
    %cst_19 = arith.constant 8.000000e+00 : f32
    %38 = vector.broadcast %cst_19 : f32 to vector<1x128xf32>
    %39 = arith.divf %37, %38 : vector<1x128xf32>
    %cst_20 = arith.constant 9.99999974E-6 : f32
    %40 = vector.broadcast %cst_20 : f32 to vector<1x128xf32>
    %41 = arith.addf %39, %40 : vector<1x128xf32>
    %42 = math.rsqrt %41 : vector<1x128xf32>
    %43 = vector.broadcast %42 : vector<1x128xf32> to vector<8x128xf32>
    %44 = arith.mulf %34, %43 : vector<8x128xf32>
    %c0_21 = arith.constant 0 : index
    %c0_22 = arith.constant 0 : index
    %45 = vector.load %arg5[%c0_21, %c0_22] : memref<1x128xf32, #tpu.memory_space<vmem>>, vector<1x128xf32>
    %46 = vector.broadcast %45 : vector<1x128xf32> to vector<8x128xf32>
    %47 = arith.mulf %44, %46 : vector<8x128xf32>
    %c0_23 = arith.constant 0 : index
    %c0_24 = arith.constant 0 : index
    %48 = vector.load %arg6[%c0_23, %c0_24] : memref<1x128xf32, #tpu.memory_space<vmem>>, vector<1x128xf32>
    %49 = vector.broadcast %48 : vector<1x128xf32> to vector<8x128xf32>
    %50 = arith.addf %47, %49 : vector<8x128xf32>
    %cst_25 = arith.constant 0.000000e+00 : f32
    %51 = vector.broadcast %cst_25 : f32 to vector<8x128xf32>
    %52 = arith.maximumf %50, %51 : vector<8x128xf32>
    %c0_26 = arith.constant 0 : index
    %c0_27 = arith.constant 0 : index
    %53 = vector.load %arg7[%c0_26, %c0_27] : memref<128x128xf32, #tpu.memory_space<vmem>>, vector<128x128xf32>
    %cst_28 = arith.constant dense<0.000000e+00> : vector<8x128xf32>
    %54 = tpu.matmul %52, %53, %cst_28 {dimension_numbers = #tpu.dot_dimension_numbers<[1], [0], [0], [1], [0, 0, 1, 1], [], []>} : vector<8x128xf32>, vector<128x128xf32>, vector<8x128xf32> -> vector<8x128xf32>
    %c0_29 = arith.constant 0 : index
    %c0_30 = arith.constant 0 : index
    %55 = vector.load %arg8[%c0_29, %c0_30] : memref<1x128xf32, #tpu.memory_space<vmem>>, vector<1x128xf32>
    %56 = vector.broadcast %55 : vector<1x128xf32> to vector<8x128xf32>
    %57 = arith.addf %54, %56 : vector<8x128xf32>
    %c0_31 = arith.constant 0 : index
    %c0_32 = arith.constant 0 : index
    %58 = vector.load %arg9[%c0_31, %c0_32] : memref<8x128xf32, #tpu.memory_space<vmem>>, vector<8x128xf32>
    tpu.vector_store %arg9[%c0_31, %c0_32], %57 {strides = array<i32>} : memref<8x128xf32, #tpu.memory_space<vmem>>, vector<8x128xf32>,
    return
  }
}

</mosaic_0001>

<bundles_post_ra>
// kernel: encoder_forward.1
= control target key start
LH: loop header
LB: loop body
LE: loop exit
PB: predicated region body
PF: predicated region fallthrough
CT: control target
= control target key end

     0   :  { %14 = vsyncpa [#allocation3], 0  ;;  %s892_s0 = inlined_call_operand.vmem [shape: f32[8,128], index: 0, kind: input, shape index: {}]   ;;  %s893_s1 = inlined_call_operand.hbm [shape: f32[128,128], index: 1, kind: input, shape index: {}]   ;;  %s894_s2 = inlined_call_operand.vmem [shape: f32[1,128], index: 2, kind: input, shape index: {}]   ;;  %s895_s3 = inlined_call_operand.vmem [shape: f32[1,128], index: 3, kind: input, shape index: {}]   ;;  %s896_s4 = inlined_call_operand.hbm [shape: f32[128,128], index: 4, kind: input, shape index: {}]   ;;  %s897_s5 = inlined_call_operand.vmem [shape: f32[1,128], index: 5, kind: input, shape index: {}]   ;;  %s898_s6 = inlined_call_operand.vmem [shape: f32[1,128], index: 6, kind: input, shape index: {}]   ;;  %s899_s7 = inlined_call_operand.hbm [shape: f32[128,128], index: 7, kind: input, shape index: {}]   ;;  %s900_s8 = inlined_call_operand.vmem [shape: f32[1,128], index: 8, kind: input, shape index: {}]   ;;  %s901_s9 = inlined_call_operand.vmem [shape: f32[8,128], index: 9, kind: output, shape index: {}]  }
   0x1   :  { %15 = vsyncpa [#allocation5], 0  ;;  %s734_s30 = smov [#allocation4]   ;;  %s735_s11 = smov [#allocation2]  }
   0x2   :  { %s39_s10 = sshll.u32 %s734_s30, 4  ;;  %s23_s12 = sshll.u32 %s735_s11, 4  ;;  %s40_s10 = int_to_ptr.vmem [resolvable:$true] %s39_s10  ;;  %s792_s12 = int_to_ptr.vmem [resolvable:$true] %s23_s12 }
   0x3   :  { %s664_s15 = scalar_lea.hbm %s896_s4, 2048 }
   0x4   :  { %p665_p0 = scmp.ne.s32.totalorder %s896_s4, %s664_s15  ;;  %p668_p1 = scmp.lt.u32.totalorder %s664_s15, %s896_s4 }
   0x6   :  { %p670_p2 = pnand %p668_p1, %p665_p0 }
   0x8   :  { %673 = shalt.err (!%p670_p2)
}
   0x9   :  { %s674_s20 = scalar_lea.vmem %s40_s10, 2048  ;;  %p679_p4 = scmp.lt.s32.totalorder %s40_s10, %s40_s10 }
   0xa   :  { %p675_p3 = scmp.ne.s32.totalorder %s40_s10, %s674_s20  ;;  %p680_p5 = scmp.lt.s32.totalorder %s674_s20, %s674_s20 }
   0xc   :  { %p681_p6 = por %p680_p5, %p679_p4 }
   0xe   :  { %p682_p7 = pnand %p681_p6, %p675_p3 }
  0x10   :  { %685 = shalt.err (!%p682_p7)
}
  0x11   :  { %s736_s21 = smov 128   ;;  %s737_s22 = smov 8  }
  0x12   :  { %45 = dma.hbm_to_vmem [thread:$0]  %s896_s4, 2048, %s40_s10, [#allocation5], %s736_s21, %s736_s21, %s737_s22  }
  0x13   :  { %s686_s27 = scalar_lea.hbm %s893_s1, 2048 }
  0x14   :  { %p687_p8 = scmp.ne.s32.totalorder %s893_s1, %s686_s27  ;;  %p690_p9 = scmp.lt.u32.totalorder %s686_s27, %s893_s1 }
  0x16   :  { %p692_p10 = pnand %p690_p9, %p687_p8 }
  0x18   :  { %695 = shalt.err (!%p692_p10)
}
  0x19   :  { %s696_s13 = scalar_lea.vmem %s792_s12, 2048  ;;  %p701_p12 = scmp.lt.s32.totalorder %s792_s12, %s792_s12 }
  0x1a   :  { %p697_p11 = scmp.ne.s32.totalorder %s792_s12, %s696_s13  ;;  %p702_p13 = scmp.lt.s32.totalorder %s696_s13, %s696_s13 }
  0x1c   :  { %p703_p0 = por %p702_p13, %p701_p12 }
  0x1e   :  { %p704_p1 = pnand %p703_p0, %p697_p11 }
  0x20   :  { %707 = shalt.err (!%p704_p1)
}
  0x21   :  { %29 = dma.hbm_to_vmem [thread:$0]  %s893_s1, 2048, %s792_s12, [#allocation3], %s736_s21, %s736_s21, %s737_s22  }
  0x22   :  { %s738_s14 = smov [#allocation6]   ;;  %s708_s18 = scalar_lea.hbm %s899_s7, 2048 }
  0x23   :  { %s55_s15 = sshll.u32 %s738_s14, 4  ;;  %p709_p2 = scmp.ne.s32.totalorder %s899_s7, %s708_s18  ;;  %s56_s15 = int_to_ptr.vmem [resolvable:$true] %s55_s15 }
  0x24   :  { %p712_p3 = scmp.lt.u32.totalorder %s708_s18, %s899_s7 }
  0x26   :  { %p714_p4 = pnand %p712_p3, %p709_p2 }
  0x28   :  { %717 = shalt.err (!%p714_p4)
}
  0x29   :  { %s718_s25 = scalar_lea.vmem %s56_s15, 2048  ;;  %p723_p6 = scmp.lt.s32.totalorder %s56_s15, %s56_s15 }
  0x2a   :  { %p719_p5 = scmp.ne.s32.totalorder %s56_s15, %s718_s25  ;;  %p724_p7 = scmp.lt.s32.totalorder %s718_s25, %s718_s25 }
  0x2c   :  { %p725_p8 = por %p724_p7, %p723_p6 }
  0x2e   :  { %p726_p9 = pnand %p725_p8, %p719_p5 }
  0x30   :  { %729 = shalt.err (!%p726_p9)
}
  0x31   :  { %61 = dma.hbm_to_vmem [thread:$0]  %s899_s7, 2048, %s56_s15, [#allocation5], %s736_s21, %s736_s21, %s737_s22  }
  0x32   :  { %730 = dma.done.wait [#allocation3], 2048  }
  0x33   :  { %731 = vsyncadd [#allocation3], 4294965248 }
  0x34   :  { %732 = dma.done.wait [#allocation5], 4096  }
  0x35   :  { %733 = vsyncadd [#allocation5], 4294963200  ;;  %v739_v0 = vmov 0.0|0.0   ;;  %vm740_vm0 = vmmov 0   ;;  %v741_v1 = vmov 0.0   ;;  %v74_v2 = vld [vmem:[#allocation2] sm:$0xff] }
  0x36   :  { %580 = vmatprep.subr.bf16.mxu0 %v739_v0  ;;  %507 = vmatprep.mubr.msk.f32.mxu0 %vm740_vm0, %v741_v1  ;;  %v75_v3 = vld [vmem:[#allocation2 + $0x8] sm:$0xff]  ;;  %v76_v4 = vld [vmem:[#allocation2 + $0x10] sm:$0xff]  ;;  %v77_v6 = vld [vmem:[#allocation2 + $0x18] sm:$0xff] }
  0x37   :  { %604 = vmatprep.subr.bf16.mxu1 %v739_v0  ;;  %542 = vmatprep.mubr.msk.f32.mxu1 %vm740_vm0, %v741_v1  ;;  %v581_v5 = vpack.c.bf16 %v75_v3, %v74_v2  ;;  %v584_v7 = vpack.c.bf16 %v77_v6, %v76_v4  ;;  %v78_v8 = vld [vmem:[#allocation2 + $0x20] sm:$0xff]  ;;  %v79_v9 = vld [vmem:[#allocation2 + $0x28] sm:$0xff]  ;;  %v80_v11 = vld [vmem:[#allocation2 + $0x30] sm:$0xff] }
  0x38   :  { %v587_v10 = vpack.c.bf16 %v79_v9, %v78_v8  ;;  %v81_v12 = vld [vmem:[#allocation2 + $0x38] sm:$0xff]  ;;  %v82_v14 = vld [vmem:[#allocation2 + $0x40] sm:$0xff]  ;;  %v83_v15 = vld [vmem:[#allocation2 + $0x48] sm:$0xff] }
  0x39   :  { %582 = vmatpush3.bf16.msra.mxu0 %v581_v5  ;;  %v590_v13 = vpack.c.bf16 %v81_v12, %v80_v11  ;;  %v593_v16 = vpack.c.bf16 %v83_v15, %v82_v14  ;;  %v84_v17 = vld [vmem:[#allocation2 + $0x50] sm:$0xff]  ;;  %v85_v18 = vld [vmem:[#allocation2 + $0x58] sm:$0xff]  ;;  %v86_v20 = vld [vmem:[#allocation2 + $0x60] sm:$0xff] }
  0x3a   :  { %583 = vmatprep.subr.bf16.mxu0 %v739_v0  ;;  %v596_v19 = vpack.c.bf16 %v85_v18, %v84_v17  ;;  %v87_v21 = vld [vmem:[#allocation2 + $0x68] sm:$0xff]  ;;  %v88_v23 = vld [vmem:[#allocation2 + $0x70] sm:$0xff]  ;;  %v89_v24 = vld [vmem:[#allocation2 + $0x78] sm:$0xff] }
  0x3b   :  { %v599_v22 = vpack.c.bf16 %v87_v21, %v86_v20  ;;  %v602_v25 = vpack.c.bf16 %v89_v24, %v88_v23  ;;  %v73_v26 = vld [vmem:[%s892_s0] sm:$0xff]  ;;  %v198_v28 = vld [vmem:[#allocation4 + $0x8] sm:$0xff]  ;;  %v199_v30 = vld [vmem:[#allocation4 + $0x10] sm:$0xff] }
  0x3c   :  { %v197_v27 = vld [vmem:[#allocation4] sm:$0xff]  ;;  %v200_v31 = vld [vmem:[#allocation4 + $0x18] sm:$0xff]  ;;  %v202_v34 = vld [vmem:[#allocation4 + $0x28] sm:$0xff] }
  0x3d   :  { %585 = vmatpush3.bf16.msra.mxu0 %v584_v7  ;;  %v605_v29 = vpack.c.bf16 %v198_v28, %v197_v27  ;;  %v608_v32 = vpack.c.bf16 %v200_v31, %v199_v30  ;;  %v201_v33 = vld [vmem:[#allocation4 + $0x20] sm:$0xff]  ;;  %v203_v36 = vld [vmem:[#allocation4 + $0x30] sm:$0xff]  ;;  %v204_v37 = vld [vmem:[#allocation4 + $0x38] sm:$0xff] }
  0x3e   :  { %586 = vmatprep.subr.bf16.mxu0 %v739_v0  ;;  %v611_v35 = vpack.c.bf16 %v202_v34, %v201_v33  ;;  %v614_v38 = vpack.c.bf16 %v204_v37, %v203_v36  ;;  %v205_v39 = vld [vmem:[#allocation4 + $0x40] sm:$0xff]  ;;  %v206_v40 = vld [vmem:[#allocation4 + $0x48] sm:$0xff]  ;;  %v207_v42 = vld [vmem:[#allocation4 + $0x50] sm:$0xff] }
  0x3f   :  { %606 = vmatpush3.bf16.msra.mxu1 %v605_v29  ;;  %v617_v41 = vpack.c.bf16 %v206_v40, %v205_v39  ;;  %v208_v43 = vld [vmem:[#allocation4 + $0x58] sm:$0xff]  ;;  %v209_v45 = vld [vmem:[#allocation4 + $0x60] sm:$0xff]  ;;  %v210_v46 = vld [vmem:[#allocation4 + $0x68] sm:$0xff] }
  0x40   :  { %607 = vmatprep.subr.bf16.mxu1 %v739_v0  ;;  %v620_v44 = vpack.c.bf16 %v208_v43, %v207_v42  ;;  %v623_v47 = vpack.c.bf16 %v210_v46, %v209_v45  ;;  %v211_v48 = vld [vmem:[#allocation4 + $0x70] sm:$0xff]  ;;  %v212_v49 = vld [vmem:[#allocation4 + $0x78] sm:$0xff]  ;;  %v419_v8 = vld [vmem:[%s894_s2] ss:$0 sm:$0xff] }
  0x41   :  { %588 = vmatpush3.bf16.msra.mxu0 %v587_v10  ;;  %v626_v50 = vpack.c.bf16 %v212_v49, %v211_v48  ;;  %v420_v10 = vld [vmem:[%s895_s3] ss:$0 sm:$0xff]  ;;  %v320_v15 = vld [vmem:[#allocation6 + $0x8] sm:$0xff]  ;;  %v321_v17 = vld [vmem:[#allocation6 + $0x10] sm:$0xff] }
  0x42   :  { %589 = vmatprep.subr.bf16.mxu0 %v739_v0  ;;  %v319_v14 = vld [vmem:[#allocation6] sm:$0xff]  ;;  %v322_v18 = vld [vmem:[#allocation6 + $0x18] sm:$0xff]  ;;  %v324_v21 = vld [vmem:[#allocation6 + $0x28] sm:$0xff] }
  0x43   :  { %609 = vmatpush3.bf16.msra.mxu1 %v608_v32  ;;  %v323_v20 = vld [vmem:[#allocation6 + $0x20] sm:$0xff]  ;;  %v325_v23 = vld [vmem:[#allocation6 + $0x30] sm:$0xff]  ;;  %v326_v24 = vld [vmem:[#allocation6 + $0x38] sm:$0xff] }
  0x44   :  { %610 = vmatprep.subr.bf16.mxu1 %v739_v0  ;;  %v328_v27 = vld [vmem:[#allocation6 + $0x48] sm:$0xff]  ;;  %v329_v29 = vld [vmem:[#allocation6 + $0x50] sm:$0xff]  ;;  %v330_v30 = vld [vmem:[#allocation6 + $0x58] sm:$0xff] }
  0x45   :  { %591 = vmatpush3.bf16.msra.mxu0 %v590_v13  ;;  %v644_v31 = vpack.c.bf16 %v330_v30, %v329_v29  ;;  %v331_v32 = vld [vmem:[#allocation6 + $0x60] sm:$0xff]  ;;  %v332_v33 = vld [vmem:[#allocation6 + $0x68] sm:$0xff]  ;;  %v334_v36 = vld [vmem:[#allocation6 + $0x78] sm:$0xff] }
  0x46   :  { %592 = vmatprep.subr.bf16.mxu0 %v739_v0  ;;  %v647_v34 = vpack.c.bf16 %v332_v33, %v331_v32 }
  0x47   :  { %612 = vmatpush3.bf16.msra.mxu1 %v611_v35  ;;  %v333_v35 = vld [vmem:[#allocation6 + $0x70] sm:$0xff] }
  0x48   :  { %613 = vmatprep.subr.bf16.mxu1 %v739_v0  ;;  %v650_v37 = vpack.c.bf16 %v334_v36, %v333_v35 }
  0x49   :  { %594 = vmatpush3.bf16.msra.mxu0 %v593_v16  ;;  %v629_v16 = vpack.c.bf16 %v320_v15, %v319_v14 }
  0x4a   :  { %595 = vmatprep.subr.bf16.mxu0 %v739_v0 }
  0x4b   :  { %615 = vmatpush3.bf16.msra.mxu1 %v614_v38 }
  0x4c   :  { %616 = vmatprep.subr.bf16.mxu1 %v739_v0 }
  0x4d   :  { %597 = vmatpush3.bf16.msra.mxu0 %v596_v19  ;;  %v632_v19 = vpack.c.bf16 %v322_v18, %v321_v17 }
  0x4e   :  { %598 = vmatprep.subr.bf16.mxu0 %v739_v0 }
  0x4f   :  { %618 = vmatpush3.bf16.msra.mxu1 %v617_v41 }
  0x50   :  { %619 = vmatprep.subr.bf16.mxu1 %v739_v0 }
  0x51   :  { %600 = vmatpush3.bf16.msra.mxu0 %v599_v22  ;;  %v635_v22 = vpack.c.bf16 %v324_v21, %v323_v20 }
  0x52   :  { %601 = vmatprep.subr.bf16.mxu0 %v739_v0 }
  0x53   :  { %621 = vmatpush3.bf16.msra.mxu1 %v620_v44 }
  0x54   :  { %622 = vmatprep.subr.bf16.mxu1 %v739_v0 }
  0x55   :  { %603 = vmatpush3.bf16.msra.mxu0 %v602_v25  ;;  %v638_v25 = vpack.c.bf16 %v326_v24, %v325_v23 }
  0x56   :  { %628 = vmatprep.subr.bf16.mxu0 %v739_v0 }
  0x57   :  { %624 = vmatpush3.bf16.msra.mxu1 %v623_v47 }
  0x58   :  { %508 = vmatmul.mubr.f32.vlgmr.msra.gmra.mrb[0].mxu0 %v73_v26  ;;  %625 = vmatprep.subr.bf16.mxu1 %v739_v0  ;;  %v327_v26 = vld [vmem:[#allocation6 + $0x40] sm:$0xff] }
  0x59   :  { %577 = vmatprep.mubr.msk.f32.mxu0 %vm740_vm0, %v741_v1  ;;  %630 = vmatpush3.bf16.msra.mxu0 %v629_v16  ;;  %v641_v28 = vpack.c.bf16 %v328_v27, %v327_v26 }
  0x5a   :  { %631 = vmatprep.subr.bf16.mxu0 %v739_v0 }
  0x5b   :  { %627 = vmatpush3.bf16.msra.mxu1 %v626_v50 }
  0x5d   :  { %633 = vmatpush3.bf16.msra.mxu0 %v632_v19 }
  0x5e   :  { %634 = vmatprep.subr.bf16.mxu0 %v739_v0 }
  0x61   :  { %636 = vmatpush3.bf16.msra.mxu0 %v635_v22 }
  0x62   :  { %637 = vmatprep.subr.bf16.mxu0 %v739_v0 }
  0x65   :  { %639 = vmatpush3.bf16.msra.mxu0 %v638_v25 }
  0x66   :  { %640 = vmatprep.subr.bf16.mxu0 %v739_v0 }
  0x69   :  { %642 = vmatpush3.bf16.msra.mxu0 %v641_v28 }
  0x6a   :  { %643 = vmatprep.subr.bf16.mxu0 %v739_v0 }
  0x6d   :  { %645 = vmatpush3.bf16.msra.mxu0 %v644_v31 }
  0x6e   :  { %646 = vmatprep.subr.bf16.mxu0 %v739_v0 }
  0x71   :  { %648 = vmatpush3.bf16.msra.mxu0 %v647_v34 }
  0x72   :  { %649 = vmatprep.subr.bf16.mxu0 %v739_v0 }
  0x75   :  { %651 = vmatpush3.bf16.msra.mxu0 %v650_v37 }
 0x12b   :  { %v156_v51 = vpop.f32.mrb[0].mxu0 }
 0x12c   :  { %v160_v52 = vrot.slane %v156_v51, 4  ;;  %v509_v53 = vpop.f32.mrb[1].mxu0 }
 0x12e   :  { %v161_v54 = vadd.f32 %v160_v52, %v156_v51 }
 0x130   :  { %v162_v55 = vrot.slane %v161_v54, 2 }
 0x132   :  { %v163_v56 = vadd.f32 %v162_v55, %v161_v54 }
 0x134   :  { %v164_v57 = vrot.slane %v163_v56, 1 }
 0x136   :  { %v165_v58 = vadd.f32 %v164_v57, %v163_v56  ;;  %v421_v57 = vld [vmem:[%s897_s5] ss:$0 sm:$0xff] }
 0x138   :  { %v167_v59 = vmul.f32 0.125, %v165_v58 }
 0x13a   :  { %v168_v60 = vsub.f32 %v156_v51, %v167_v59  ;;  %v422_v59 = vld [vmem:[%s898_s6] ss:$0 sm:$0xff] }
 0x13c   :  { %v169_v61 = vmul.f32 %v168_v60, %v168_v60 }
 0x13e   :  { %v170_v62 = vrot.slane %v169_v61, 4 }
 0x140   :  { %v171_v63 = vadd.f32 %v170_v62, %v169_v61 }
 0x142   :  { %v172_v1 = vrot.slane %v171_v63, 2 }
 0x144   :  { %v173_v2 = vadd.f32 %v172_v1, %v171_v63  ;;  %v423_v63 = vld [vmem:[%s900_s8] ss:$0 sm:$0xff] }
 0x146   :  { %v174_v3 = vrot.slane %v173_v2, 1 }
 0x148   :  { %v175_v4 = vadd.f32 %v174_v3, %v173_v2 }
 0x14a   :  { %v176_v5 = vmul.f32 0.125, %v175_v4 }
 0x14c   :  { %v177_v6 = vadd.f32 1e-05, %v176_v5 }
 0x14e   :  { %660 = vrsqrt.f32 %v177_v6 }
 0x158   :  { %v661_v7 = vpop.eup %660 }
 0x159   :  { %v179_v9 = vmul.f32 %v661_v7, %v168_v60 }
 0x15b   :  { %v187_v11 = vmul.f32 %v419_v8, %v179_v9 }
 0x15d   :  { %v195_v12 = vadd.f32 %v420_v10, %v187_v11 }
 0x15f   :  { %v196_v13 = vmax.f32 %v195_v12, 0.0 }
 0x161   :  { %543 = vmatmul.mubr.f32.vlgmr.msra.gmra.mrb[0].mxu1 %v196_v13 }
 0x234   :  { %v279_v38 = vpop.f32.mrb[0].mxu1 }
 0x235   :  { %v283_v39 = vrot.slane %v279_v38, 4  ;;  %v544_v40 = vpop.f32.mrb[1].mxu1 }
 0x237   :  { %v284_v41 = vadd.f32 %v283_v39, %v279_v38 }
 0x239   :  { %v285_v42 = vrot.slane %v284_v41, 2 }
 0x23b   :  { %v286_v43 = vadd.f32 %v285_v42, %v284_v41 }
 0x23d   :  { %v287_v44 = vrot.slane %v286_v43, 1 }
 0x23f   :  { %v288_v45 = vadd.f32 %v287_v44, %v286_v43 }
 0x241   :  { %v289_v46 = vmul.f32 0.125, %v288_v45 }
 0x243   :  { %v290_v47 = vsub.f32 %v279_v38, %v289_v46 }
 0x245   :  { %v291_v48 = vmul.f32 %v290_v47, %v290_v47 }
 0x247   :  { %v292_v49 = vrot.slane %v291_v48, 4 }
 0x249   :  { %v293_v50 = vadd.f32 %v292_v49, %v291_v48 }
 0x24b   :  { %v294_v51 = vrot.slane %v293_v50, 2 }
 0x24d   :  { %v295_v52 = vadd.f32 %v294_v51, %v293_v50 }
 0x24f   :  { %v296_v0 = vrot.slane %v295_v52, 1 }
 0x251   :  { %v297_v53 = vadd.f32 %v296_v0, %v295_v52 }
 0x253   :  { %v298_v54 = vmul.f32 0.125, %v297_v53 }
 0x255   :  { %v299_v55 = vadd.f32 1e-05, %v298_v54 }
 0x257   :  { %662 = vrsqrt.f32 %v299_v55 }
 0x261   :  { %v663_v56 = vpop.eup %662 }
 0x262   :  { %v301_v58 = vmul.f32 %v663_v56, %v290_v47 }
 0x264   :  { %v309_v60 = vmul.f32 %v421_v57, %v301_v58 }
 0x266   :  { %v317_v61 = vadd.f32 %v422_v59, %v309_v60 }
 0x268   :  { %v318_v62 = vmax.f32 %v317_v61, 0.0 }
 0x26a   :  { %578 = vmatmul.mubr.f32.vlgmr.msra.gmra.mrb[2].mxu0 %v318_v62 }
 0x33d   :  { %v408_v1 = vpop.f32.mrb[2].mxu0 }
 0x33e   :  { %v409_v2 = vadd.f32 %v423_v63, %v408_v1  ;;  %v579_v3 = vpop.f32.mrb[3].mxu0 }
 0x340   :  { %412 = vst [vmem:[%s901_s9] sm:$0xff] %v409_v2 }
 0x341   :  { %417 = vsyncpa [#allocation3], 1 }
 0x342   :  { %418 = vsyncpa [#allocation5], 1 }

</bundles_post_ra>
